<compile_context>
chip_gen: v7x
topology: tpu7x:2x2x1
jax: 0.10.0
libtpu: 0.0.40
codegen_flags: <defaults>
</compile_context>

<pallas_src>
import functools

import jax
import jax.numpy as jnp
import numpy as np
from jax import lax
from jax.experimental import pallas as pl
from jax.experimental.pallas import tpu as pltpu


def _round_up(n, m):
    return ((n + m - 1) // m) * m


def _siamese_kernel(x_ref, p_ref, out_ref, *, batch, input_dim, hidden_dim,
                    head_out, w2_row):
    """Single-pass Siamese forward, batch on the lane axis.

    x_ref  : [input_dim + 1, 2B] f32 (cols 0..B-1 = x1, B..2B-1 = x2; last row = 1)
    p_ref  : [w2_row + head_out, max(input_dim, hidden_dim) + 1] f32 packed params
    out_ref: [1, B] f32 lane-dense similarity
    """
    p = p_ref[...]
    # Bias-augmented weights. Row `hidden_dim` of w1 is a one-hot that carries
    # the ones-row of x through the ReLU, so b2 can be folded into w2 too.
    w1 = p[0:hidden_dim + 1, 0:input_dim + 1]            # [H+1, D+1]
    w2 = p[w2_row:w2_row + head_out, 0:hidden_dim + 1]   # [O,   H+1]

    # Linear(input_dim->hidden) + bias + ReLU: one MXU pass for both branches.
    h = jnp.maximum(
        jnp.dot(w1, x_ref[...], preferred_element_type=jnp.float32), 0.0)
    # TODO(synk): Dropout(0.2) is identity in eval mode; a PRNG mask would be
    # needed to reuse this kernel as a training forward.
    # Linear(hidden->head_output_dim) + bias: second MXU pass.
    emb = jnp.dot(w2, h, preferred_element_type=jnp.float32)   # [O, 2B]

    e1 = emb[:, :batch]
    e2 = emb[:, batch:]

    # F.cosine_similarity(dim=1, eps=1e-8) == dot / (max(||e1||,eps)*max(||e2||,eps)).
    # Single fused rsqrt on the EUP (one push instead of two / sqrt+divide).
    dot = jnp.sum(e1 * e2, axis=0, keepdims=True)        # (1, B)
    n1sq = jnp.sum(e1 * e1, axis=0, keepdims=True)
    n2sq = jnp.sum(e2 * e2, axis=0, keepdims=True)
    eps2 = jnp.float32(1e-8 * 1e-8)
    cos = dot * lax.rsqrt(jnp.maximum(n1sq, eps2) * jnp.maximum(n2sq, eps2))

    # similarity = clamp((cos + 1) / 2, eps, 1 - eps)
    eps = 1e-7
    out_ref[...] = jnp.clip((cos + 1.0) * 0.5, eps, 1.0 - eps)


def pack_params(w1, b1, w2, b2):
    """One-off (init-time) packing of all parameters into a single f32 slab.

    Layout (rows x cols), cols = max(input_dim, hidden_dim) + 1:
      rows [0, hidden)            : w1, with b1 in column `input_dim`
      row  hidden                  : one-hot at column `input_dim` (ReLU passthrough of the ones-row)
      rows [w2_row, w2_row+head)  : w2, with b2 in column `hidden_dim`
    """
    hidden_dim, input_dim = w1.shape
    head_out = w2.shape[0]
    w2_row = _round_up(hidden_dim + 1, 8)
    cols = max(input_dim, hidden_dim) + 1
    slab = jnp.zeros((w2_row + head_out, cols), jnp.float32)
    slab = slab.at[0:hidden_dim, 0:input_dim].set(w1.astype(jnp.float32))
    slab = slab.at[0:hidden_dim, input_dim].set(b1.astype(jnp.float32))
    slab = slab.at[hidden_dim, input_dim].set(1.0)
    slab = slab.at[w2_row:w2_row + head_out, 0:hidden_dim].set(w2.astype(jnp.float32))
    slab = slab.at[w2_row:w2_row + head_out, hidden_dim].set(b2.astype(jnp.float32))
    return slab


def siamese_forward(x1, x2, param_slab, *, hidden_dim, head_output_dim):
    """x1, x2: [B, input_dim] f32; param_slab from pack_params().
    Returns similarity [B, 1] f32 (matches SiameseNetwork.forward)."""
    batch, input_dim = x1.shape
    w2_row = _round_up(hidden_dim + 1, 8)

    # Both branches stacked on the lane axis + trailing ones-row (bias fold).
    ones = jnp.ones((2 * batch, 1), jnp.float32)
    x_aug = jnp.concatenate([jnp.concatenate([x1, x2], axis=0), ones], axis=1).T

    kern = functools.partial(
        _siamese_kernel, batch=batch, input_dim=input_dim,
        hidden_dim=hidden_dim, head_out=head_output_dim, w2_row=w2_row)

    vmem = pl.BlockSpec(memory_space=pltpu.MemorySpace.VMEM)
    sim = pl.pallas_call(
        kern,
        out_shape=jax.ShapeDtypeStruct((1, batch), jnp.float32),
        in_specs=[vmem, vmem],
        out_specs=vmem,
        compiler_params=pltpu.CompilerParams(
            allow_input_fusion=[True, True]),
    )(x_aug, param_slab)
    return sim.reshape(batch, 1)   # reshape, not transpose: keep store lane-dense


def init_params(key, input_dim, hidden_dim, head_output_dim):
    """Deterministic synthetic parameters (PyTorch-style uniform fan-in init)."""
    k1, k2, k3, k4 = jax.random.split(key, 4)
    bound1 = 1.0 / jnp.sqrt(input_dim)
    bound2 = 1.0 / jnp.sqrt(hidden_dim)
    w1 = jax.random.uniform(k1, (hidden_dim, input_dim), jnp.float32, -bound1, bound1)
    b1 = jax.random.uniform(k2, (hidden_dim,), jnp.float32, -bound1, bound1)
    w2 = jax.random.uniform(k3, (head_output_dim, hidden_dim), jnp.float32, -bound2, bound2)
    b2 = jax.random.uniform(k4, (head_output_dim,), jnp.float32, -bound2, bound2)
    return w1, b1, w2, b2


def _reference_forward(x1, x2, w1, b1, w2, b2):
    """Pure-numpy f32 reference of the PyTorch module in eval mode."""
    x1, x2, w1, b1, w2, b2 = (np.asarray(a, np.float32)
                              for a in (x1, x2, w1, b1, w2, b2))

    def embed(x):
        h = np.maximum(x @ w1.T + b1, 0.0)
        return h @ w2.T + b2

    e1, e2 = embed(x1), embed(x2)
    dot = np.sum(e1 * e2, axis=-1)
    n1 = np.maximum(np.linalg.norm(e1, axis=-1), 1e-8)
    n2 = np.maximum(np.linalg.norm(e2, axis=-1), 1e-8)
    cos = dot / (n1 * n2)
    return np.clip((cos + 1.0) / 2.0, 1e-7, 1.0 - 1e-7)[:, None]


if __name__ == "__main__":
    batch = 8
    input_dim = 32
    hidden_dim = 32
    head_output_dim = 64

    key = jax.random.PRNGKey(0)
    kx1, kx2, kp = jax.random.split(key, 3)
    x1 = jax.random.normal(kx1, (batch, input_dim), jnp.float32)
    x2 = jax.random.normal(kx2, (batch, input_dim), jnp.float32)
    w1, b1, w2, b2 = init_params(kp, input_dim, hidden_dim, head_output_dim)

    # One-off, init-time parameter packing (no per-call casts / reshuffles).
    param_slab = pack_params(w1, b1, w2, b2)

    # Jit the whole wrapper so concat/transpose/ones fuse into the pallas operand.
    forward = jax.jit(functools.partial(
        siamese_forward, hidden_dim=hidden_dim, head_output_dim=head_output_dim))

    sim = jax.block_until_ready(forward(x1, x2, param_slab))

    assert sim.shape == (batch, 1), sim.shape
    assert bool(jnp.all(sim >= 1e-7)) and bool(jnp.all(sim <= 1.0 - 1e-7))

    ref = _reference_forward(x1, x2, w1, b1, w2, b2)
    max_err = float(np.max(np.abs(np.asarray(sim) - ref)))
    assert max_err < 1e-3, max_err

    print("KERNEL_OK")
</pallas_src>

<mosaic_0001>
module attributes {stable_mosaic.version = 11 : i64} {
  func.func @_siamese_kernel(%arg0: memref<33x16xf32, #tpu.memory_space<vmem>>, %arg1: memref<104x33xf32, #tpu.memory_space<vmem>>, %arg2: memref<1x8xf32, #tpu.memory_space<vmem>>) attributes {dimension_semantics = [], scalar_prefetch = 0 : i64, scratch_operands = 0 : i64, tpu.core_type = #tpu.core_type<tc>} {
    %c0 = arith.constant 0 : index
    %c0_0 = arith.constant 0 : index
    %0 = vector.load %arg1[%c0, %c0_0] : memref<104x33xf32, #tpu.memory_space<vmem>>, vector<104x33xf32>
    %1 = vector.extract_strided_slice %0 {offsets = [0, 0], sizes = [33, 33], strides = [1, 1]} : vector<104x33xf32> to vector<33x33xf32>
    %2 = vector.extract_strided_slice %0 {offsets = [40, 0], sizes = [64, 33], strides = [1, 1]} : vector<104x33xf32> to vector<64x33xf32>
    %c0_1 = arith.constant 0 : index
    %c0_2 = arith.constant 0 : index
    %3 = vector.load %arg0[%c0_1, %c0_2] : memref<33x16xf32, #tpu.memory_space<vmem>>, vector<33x16xf32>
    %cst = arith.constant dense<0.000000e+00> : vector<33x16xf32>
    %4 = tpu.matmul %1, %3, %cst {dimension_numbers = #tpu.dot_dimension_numbers<[1], [0], [0], [1], [0, 0, 1, 1], [], []>} : vector<33x33xf32>, vector<33x16xf32>, vector<33x16xf32> -> vector<33x16xf32>
    %cst_3 = arith.constant 0.000000e+00 : f32
    %5 = vector.broadcast %cst_3 : f32 to vector<33x16xf32>
    %6 = arith.maximumf %4, %5 : vector<33x16xf32>
    %cst_4 = arith.constant dense<0.000000e+00> : vector<64x16xf32>
    %7 = tpu.matmul %2, %6, %cst_4 {dimension_numbers = #tpu.dot_dimension_numbers<[1], [0], [0], [1], [0, 0, 1, 1], [], []>} : vector<64x33xf32>, vector<33x16xf32>, vector<64x16xf32> -> vector<64x16xf32>
    %8 = vector.extract_strided_slice %7 {offsets = [0, 0], sizes = [64, 8], strides = [1, 1]} : vector<64x16xf32> to vector<64x8xf32>
    %9 = vector.extract_strided_slice %7 {offsets = [0, 8], sizes = [64, 8], strides = [1, 1]} : vector<64x16xf32> to vector<64x8xf32>
    %10 = arith.mulf %8, %9 : vector<64x8xf32>
    %cst_5 = arith.constant dense<0.000000e+00> : vector<8xf32>
    %11 = vector.multi_reduction <add>, %10, %cst_5 [0] : vector<64x8xf32> to vector<8xf32>
    %12 = vector.shape_cast %11 : vector<8xf32> to vector<1x8xf32>
    %13 = arith.mulf %8, %8 : vector<64x8xf32>
    %cst_6 = arith.constant dense<0.000000e+00> : vector<8xf32>
    %14 = vector.multi_reduction <add>, %13, %cst_6 [0] : vector<64x8xf32> to vector<8xf32>
    %15 = vector.shape_cast %14 : vector<8xf32> to vector<1x8xf32>
    %16 = arith.mulf %9, %9 : vector<64x8xf32>
    %cst_7 = arith.constant dense<0.000000e+00> : vector<8xf32>
    %17 = vector.multi_reduction <add>, %16, %cst_7 [0] : vector<64x8xf32> to vector<8xf32>
    %18 = vector.shape_cast %17 : vector<8xf32> to vector<1x8xf32>
    %cst_8 = arith.constant 1.000000e-16 : f32
    %19 = vector.broadcast %cst_8 : f32 to vector<1x8xf32>
    %20 = arith.maximumf %15, %19 : vector<1x8xf32>
    %cst_9 = arith.constant 1.000000e-16 : f32
    %21 = vector.broadcast %cst_9 : f32 to vector<1x8xf32>
    %22 = arith.maximumf %18, %21 : vector<1x8xf32>
    %23 = arith.mulf %20, %22 : vector<1x8xf32>
    %24 = math.rsqrt %23 : vector<1x8xf32>
    %25 = arith.mulf %12, %24 : vector<1x8xf32>
    %cst_10 = arith.constant 1.000000e+00 : f32
    %26 = vector.broadcast %cst_10 : f32 to vector<1x8xf32>
    %27 = arith.addf %25, %26 : vector<1x8xf32>
    %cst_11 = arith.constant 5.000000e-01 : f32
    %28 = vector.broadcast %cst_11 : f32 to vector<1x8xf32>
    %29 = arith.mulf %27, %28 : vector<1x8xf32>
    %cst_12 = arith.constant 1.000000e-07 : f32
    %cst_13 = arith.constant 0.99999988 : f32
    %30 = vector.broadcast %cst_12 : f32 to vector<1x8xf32>
    %31 = arith.maximumf %30, %29 : vector<1x8xf32>
    %32 = vector.broadcast %cst_13 : f32 to vector<1x8xf32>
    %33 = arith.minimumf %32, %31 : vector<1x8xf32>
    %c0_14 = arith.constant 0 : index
    %c0_15 = arith.constant 0 : index
    %34 = vector.load %arg2[%c0_14, %c0_15] : memref<1x8xf32, #tpu.memory_space<vmem>>, vector<1x8xf32>
    tpu.vector_store %arg2[%c0_14, %c0_15], %33 {strides = array<i32>} : memref<1x8xf32, #tpu.memory_space<vmem>>, vector<1x8xf32>,
    return
  }
}

</mosaic_0001>

<bundles_post_ra>
// kernel: siamese_forward.2
= control target key start
LH: loop header
LB: loop body
LE: loop exit
PB: predicated region body
PF: predicated region fallthrough
CT: control target
= control target key end

     0   :  { %s1038_s0 = inlined_call_operand.vmem [shape: f32[104,33], index: 0, kind: input, shape index: {}]   ;;  %s1039_s1 = inlined_call_operand.vmem [shape: f32[8,32], index: 1, kind: input, shape index: {}]   ;;  %s1040_s2 = inlined_call_operand.<no memory space> [shape: f32[], index: 2, kind: input, shape index: {}]   ;;  %s1041_s3 = inlined_call_operand.vmem [shape: f32[8,32], index: 3, kind: input, shape index: {}]   ;;  %s1042_s4 = inlined_call_operand.<no memory space> [shape: f32[], index: 4, kind: input, shape index: {}]   ;;  %s1043_s5 = inlined_call_operand.<no memory space> [shape: s32[], index: 5, kind: input, shape index: {}]   ;;  %s1044_s6 = inlined_call_operand.hbm [shape: f32[1,8], index: 6, kind: output, shape index: {}]  }
   0x1   :  { %v11_v0 = vstv %s1040_s2  ;;  %v858_v1 = vstv %s1042_s4  ;;  %v863_v2 = vstv %s1043_s5 }
   0x2   :  { %v53_v3 = vlaneseq  ;;  %v64_v6 = vld [vmem:[%s1041_s3] sm:$0xff] }
   0x4   :  { %v54_v4 = vand.u32 127, %v53_v3  ;;  %v71_v5 = vshrl.u32 %v53_v3, 7 }
   0x5   :  { %15 = vsyncpa [#allocation13], 0  ;;  %v677_v7 = vld [vmem:[%s1041_s3 + $0x10] sm:$0xff]  ;;  %v52_v11 = vld [vmem:[%s1039_s1] sm:$0xff]  ;;  %v811_v13 = vmov 0.0|0.0   ;;  %s812_s15 = smov 8  }
   0x6   :  { %v55_v8 = vadd.s32 128, %v54_v4  ;;  %v676_v9 = vld [vmem:[%s1039_s1 + $0x10] sm:$0xff]  ;;  %v240_v10 = vadd.s32 32, %v71_v5  ;;  %v678_v12 = vld [vmem:[%s1039_s1 + $0x18] sm:$0xff]  ;;  %vm68_vm0 = vcmp.lt.s32.totalorder %v54_v4, 8  ;;  %765 = vmatprep.subr.bf16.mxu0 %v811_v13  ;;  %vm60_vm1 = vcmp.lt.s32.totalorder %v54_v4, 120 }
   0x7   :  { %v674_v14 = vld [vmem:[%s1039_s1 + $0x8] sm:$0xff]  ;;  %v168_v15 = vadd.s32 16, %v71_v5  ;;  %v69_v16 = vsel %vm68_vm0, %v64_v6, %v11_v0  ;;  %vm76_vm2 = vcmp.lt.s32.totalorder %v71_v5, %v863_v2  ;;  %v164_v17 = vsel %vm68_vm0, %v677_v7, %v11_v0  ;;  %v679_v19 = vld [vmem:[%s1041_s3 + $0x18] sm:$0xff]  ;;  %v261_v53 = vld [vmem:[%s1038_s0] sm:$0xff]  ;;  %s815_s1 = smov 120  }
   0x8   :  { %vm56_vm3 = vcmp.lt.s32.totalorder %v55_v8, 136  ;;  %vm243_vm4 = vcmp.lt.s32.totalorder %v240_v10, %v863_v2  ;;  %v81_v18 = vsel %vm76_vm2, %v69_v16, %v858_v1  ;;  %v675_v24 = vld [vmem:[%s1041_s3 + $0x8] sm:$0xff]  ;;  %v212_v29 = vsel %vm68_vm0, %v679_v19, %v11_v0  ;;  %v263_v55 = vld [vmem:[%s1038_s0 + $0x10] sm:$0xff]  ;;  %v264_v56 = vld [vmem:[%s1038_s0 + $0x18] sm:$0xff] }
   0x9   :  { %v151_v20 = vsel %vm56_vm3, %v676_v9, %v11_v0  ;;  %v248_v21 = vsel %vm243_vm4, %v11_v0, %v858_v1  ;;  %v57_v22 = vsel %vm56_vm3, %v52_v11, %v11_v0  ;;  %v199_v23 = vsel %vm56_vm3, %v678_v12, %v11_v0  ;;  %v262_v54 = vld [vmem:[%s1038_s0 + $0x8] sm:$0xff]  ;;  %v265_v57 = vld [vmem:[%s1038_s0 + $0x20] sm:$0xff]  ;;  %v267_v12 = vld [vmem:[%s1038_s0 + $0x30] sm:$0xff] }
   0xa   :  { %v155_v25 = vsel %vm60_vm1, %v151_v20, %v11_v0  ;;  %260 = vst [vmem:[#allocation14 + $0x20] sm:$0xff] %v248_v21  ;;  %v61_v26 = vsel %vm60_vm1, %v57_v22, %v11_v0  ;;  %v103_v27 = vsel %vm56_vm3, %v674_v14, %v11_v0  ;;  %v203_v28 = vsel %vm60_vm1, %v199_v23, %v11_v0  ;;  %v266_v58 = vld [vmem:[%s1038_s0 + $0x28] sm:$0xff]  ;;  %v269_v14 = vld [vmem:[%s1038_s0 + $0x40] sm:$0xff]  ;;  %v271_v16 = vld [vmem:[%s1038_s0 + $0x50] sm:$0xff] }
   0xb   :  { %156 = vrot.lane.b32.xlu1 %v155_v25, %s812_s15  ;;  %62 = vrot.lane.b32.xlu0 %v61_v26, %s812_s15  ;;  %vm171_vm5 = vcmp.lt.s32.totalorder %v168_v15, %v863_v2  ;;  %v216_v30 = vadd.s32 24, %v71_v5  ;;  %v107_v31 = vsel %vm60_vm1, %v103_v27, %v11_v0  ;;  %v116_v33 = vsel %vm68_vm0, %v675_v24, %v11_v0  ;;  %v270_v15 = vld [vmem:[%s1038_s0 + $0x48] sm:$0xff] }
   0xc   :  { %v176_v32 = vsel %vm171_vm5, %v164_v17, %v858_v1  ;;  %v120_v34 = vadd.s32 8, %v71_v5  ;;  %vm813_vm8 = vmmov 0   ;;  %v814_v37 = vmov 0.0   ;;  %v272_v17 = vld [vmem:[%s1038_s0 + $0x58] sm:$0xff] }
   0xd   :  { %vm219_vm6 = vcmp.lt.s32.totalorder %v216_v30, %v863_v2  ;;  %728 = vmatprep.mubr.msk.f32.mxu0 %vm813_vm8, %v814_v37  ;;  %vm295_vm9 = vcmask 1040384   ;;  %vm279_vm10 = vcmask 269312   ;;  %vm566_vm11 = vcmask 64512  }
   0xe   :  { %v224_v35 = vsel %vm219_vm6, %v212_v29, %v858_v1  ;;  %vm123_vm7 = vcmp.lt.s32.totalorder %v120_v34, %v863_v2  ;;  %753 = vmatprep.mubr.msk.f32.mxu1 %vm279_vm10, %v266_v58  ;;  %vm617_vm12 = vcmask 130112   ;;  %vm652_vm13 = vcmask 57344  }
   0xf   :  { %204 = vrot.lane.b32.xlu1 %v203_v28, %s812_s15  ;;  %108 = vrot.lane.b32.xlu0 %v107_v31, %s812_s15  ;;  %v128_v36 = vsel %vm123_vm7, %v116_v33, %v858_v1 }
  0x11   :  { %v278_v52 = vld [vmem:[#allocation14 + $0x20] sm:$0x1] }
  0x7d   :  { %v157_v38 = vpop.permute.xlu1 %156  ;;  %v63_v39 = vpop.permute.xlu0 %62 }
  0x7e   :  { %v180_v40 = vsel %vm171_vm5, %v157_v38, %v858_v1  ;;  %v85_v41 = vsel %vm76_vm2, %v63_v39, %v858_v1 }
  0x7f   :  { %v184_v42 = vmax.f32 %v176_v32, %v180_v40  ;;  %v89_v43 = vmax.f32 %v81_v18, %v85_v41  ;;  %v273_v18 = vld [vmem:[%s1038_s0 + $0x60] sm:$0xff] }
  0x81   :  { %v205_v44 = vpop.permute.xlu1 %204  ;;  %v109_v45 = vpop.permute.xlu0 %108 }
  0x82   :  { %v228_v46 = vsel %vm219_vm6, %v205_v44, %v858_v1  ;;  %v132_v47 = vsel %vm123_vm7, %v109_v45, %v858_v1 }
  0x83   :  { %v232_v48 = vmax.f32 %v224_v35, %v228_v46  ;;  %v136_v49 = vmax.f32 %v128_v36, %v132_v47 }
  0x85   :  { %v766_v50 = vpack.c.bf16 %v136_v49, %v89_v43  ;;  %v769_v51 = vpack.c.bf16 %v232_v48, %v184_v42 }
  0x87   :  { %767 = vmatpush3.bf16.msra.mxu0 %v766_v50 }
  0x88   :  { %768 = vmatprep.subr.bf16.mxu0 %v811_v13  ;;  %v268_v13 = vld [vmem:[%s1038_s0 + $0x38] sm:$0xff]  ;;  %s816_s0 = smov [#allocation12]  }
  0x89   :  { %s660_s14 = sshll.u32 %s816_s0, 4  ;;  %s661_s14 = int_to_ptr.vmem [resolvable:$true] %s660_s14 }
  0x8a   :  { %s787_s15 = scalar_lea.vmem %s661_s14, 16  ;;  %s791_s3 = scalar_lea.vmem %s661_s14, 32 }
  0x8b   :  { %770 = vmatpush3.bf16.msra.mxu0 %v769_v51  ;;  %p788_p0 = scmp.ne.s32.totalorder %s661_s14, %s787_s15  ;;  %p792_p1 = scmp.lt.s32.totalorder %s661_s14, %s661_s14 }
  0x8c   :  { %726 = vmatprep.subr.mxu0 %v814_v37  ;;  %p793_p2 = scmp.lt.s32.totalorder %s791_s3, %s787_s15 }
  0x8e   :  { %p794_p3 = por %p793_p2, %p792_p1 }
  0x8f   :  { %727 = vmatpush3.msk.msra.mxu0 %vm295_vm9, %v278_v52 }
  0x90   :  { %729 = vmatmul.mubr.msk.f32.vlgmr.msra.gmra.mrb[0].mxu0 %vm279_vm10, %v261_v53  ;;  %p795_p4 = pnand %p794_p3, %p788_p0 }
  0x91   :  { %731 = vmatprep.mubr.msk.f32.mxu0 %vm813_vm8, %v814_v37 }
  0x94   :  { %732 = vmatmul.mubr.msk.f32.gmra.mrb[2].mxu0 %vm279_vm10, %v262_v54 }
  0x95   :  { %734 = vmatprep.mubr.msk.f32.mxu0 %vm813_vm8, %v814_v37 }
  0x98   :  { %735 = vmatmul.mubr.msk.f32.gmra.mrb[4].mxu0 %vm279_vm10, %v263_v55 }
  0x99   :  { %737 = vmatprep.mubr.msk.f32.mxu0 %vm813_vm8, %v814_v37 }
  0x9c   :  { %738 = vmatmul.mubr.msk.f32.gmra.mrb[6].mxu0 %vm279_vm10, %v264_v56 }
  0x9d   :  { %740 = vmatprep.mubr.msk.f32.mxu0 %vm813_vm8, %v814_v37 }
  0xa0   :  { %741 = vmatmul.mubr.msk.f32.gmra.mrb[8].mxu0 %vm279_vm10, %v265_v57 }
 0x163   :  { %v365_v59 = vpop.f32.mrb[0].mxu0 }
 0x164   :  { %v730_v60 = vpop.f32.mrb[1].mxu0  ;;  %v389_v62 = vmax.f32 %v365_v59, 0.0 }
 0x167   :  { %v370_v61 = vpop.f32.mrb[2].mxu0 }
 0x168   :  { %v390_v63 = vmax.f32 %v370_v61, 0.0  ;;  %v733_v0 = vpop.f32.mrb[3].mxu0 }
 0x16a   :  { %v771_v1 = vpack.c.bf16 %v390_v63, %v389_v62 }
 0x16b   :  { %v375_v2 = vpop.f32.mrb[4].mxu0 }
 0x16c   :  { %v736_v3 = vpop.f32.mrb[5].mxu0  ;;  %772 = vmatprep.subr.bf16.mxu1 %v771_v1  ;;  %v391_v5 = vmax.f32 %v375_v2, 0.0 }
 0x16d   :  { %774 = vmatpush3.bf16.msra.mxu1 %v771_v1 }
 0x16f   :  { %v380_v4 = vpop.f32.mrb[6].mxu0 }
 0x170   :  { %v392_v6 = vmax.f32 %v380_v4, 0.0  ;;  %v739_v7 = vpop.f32.mrb[7].mxu0 }
 0x172   :  { %v775_v8 = vpack.c.bf16 %v392_v6, %v391_v5 }
 0x173   :  { %v385_v9 = vpop.f32.mrb[8].mxu0 }
 0x174   :  { %v393_v10 = vmax.f32 %v385_v9, 0.0  ;;  %776 = vmatprep.subr.bf16.mxu1 %v775_v8  ;;  %v742_v11 = vpop.f32.mrb[9].mxu0 }
 0x175   :  { %778 = vmatpush3.bf16.msra.mxu1 %v775_v8 }
 0x176   :  { %751 = vmatprep.subr.msk.mxu1 %vm295_vm9, %v393_v10 }
 0x179   :  { %752 = vmatpush3.msk.msra.mxu1 %vm295_vm9, %v393_v10 }
 0x17a   :  { %754 = vmatmul.mubr.msk.f32.vlgmr.msra.gmra.mrb[0].mxu1 %vm279_vm10, %v267_v12 }
 0x17b   :  { %756 = vmatprep.mubr.msk.f32.mxu1 %vm279_vm10, %v268_v13 }
 0x17e   :  { %757 = vmatmul.mubr.msk.f32.gmra.mrb[2].mxu1 %vm279_vm10, %v269_v14 }
 0x17f   :  { %759 = vmatprep.mubr.msk.f32.mxu1 %vm279_vm10, %v270_v15 }
 0x182   :  { %760 = vmatmul.mubr.msk.f32.gmra.mrb[4].mxu1 %vm279_vm10, %v271_v16 }
 0x183   :  { %762 = vmatprep.mubr.msk.f32.mxu1 %vm279_vm10, %v272_v17 }
 0x186   :  { %763 = vmatmul.mubr.msk.f32.gmra.mrb[6].mxu1 %vm279_vm10, %v273_v18 }
 0x24d   :  { %v987_v19 = vpop.f32.mrb[0].mxu1 }
 0x24e   :  { %v589_v20 = vmul.f32 %v987_v19, %v987_v19  ;;  %536 = vrot.lane.b32.xlu1 %v987_v19, %s815_s1  ;;  %v487_v21 = vpop.f32.mrb[1].mxu1 }
 0x24f   :  { %v588_v22 = vmul.f32 %v487_v21, %v487_v21  ;;  %534 = vrot.lane.b32.xlu0 %v487_v21, %s815_s1 }
 0x250   :  { %v597_v23 = vsel %vm566_vm11, %v589_v20, 0.0  ;;  %v619_v24 = vsel %vm617_vm12, %v589_v20, 0.0 }
 0x251   :  { %v596_v25 = vsel %vm566_vm11, %v588_v22, 0.0  ;;  %v618_v26 = vsel %vm617_vm12, %v588_v22, 0.0  ;;  %v758_v27 = vpop.f32.mrb[2].mxu1 }
 0x252   :  { %v598_v28 = vadd.f32 %v597_v23, %v596_v25  ;;  %v620_v29 = vadd.f32 %v619_v24, %v618_v26  ;;  %540 = vrot.lane.b32.xlu1 %v758_v27, %s815_s1  ;;  %v497_v30 = vpop.f32.mrb[3].mxu1  ;;  %v591_v31 = vmul.f32 %v758_v27, %v758_v27 }
 0x253   :  { %v590_v32 = vmul.f32 %v497_v30, %v497_v30  ;;  %538 = vrot.lane.b32.xlu0 %v497_v30, %s815_s1 }
 0x254   :  { %v601_v39 = vsel %vm566_vm11, %v591_v31, 0.0  ;;  %v623_v40 = vsel %vm617_vm12, %v591_v31, 0.0 }
 0x255   :  { %v599_v33 = vsel %vm566_vm11, %v590_v32, 0.0  ;;  %v621_v34 = vsel %vm617_vm12, %v590_v32, 0.0  ;;  %v761_v35 = vpop.f32.mrb[4].mxu1 }
 0x256   :  { %v600_v36 = vadd.f32 %v599_v33, %v598_v28  ;;  %v622_v37 = vadd.f32 %v621_v34, %v620_v29  ;;  %544 = vrot.lane.b32.xlu1 %v761_v35, %s815_s1  ;;  %v507_v38 = vpop.f32.mrb[5].mxu1  ;;  %v593_v41 = vmul.f32 %v761_v35, %v761_v35 }
 0x257   :  { %v592_v42 = vmul.f32 %v507_v38, %v507_v38  ;;  %542 = vrot.lane.b32.xlu0 %v507_v38, %s815_s1 }
 0x258   :  { %v602_v43 = vadd.f32 %v601_v39, %v600_v36  ;;  %v624_v44 = vadd.f32 %v623_v40, %v622_v37  ;;  %v605_v51 = vsel %vm566_vm11, %v593_v41, 0.0  ;;  %v627_v52 = vsel %vm617_vm12, %v593_v41, 0.0 }
 0x259   :  { %v603_v45 = vsel %vm566_vm11, %v592_v42, 0.0  ;;  %v625_v46 = vsel %vm617_vm12, %v592_v42, 0.0  ;;  %v764_v47 = vpop.f32.mrb[6].mxu1 }
 0x25a   :  { %v604_v48 = vadd.f32 %v603_v45, %v602_v43  ;;  %v626_v49 = vadd.f32 %v625_v46, %v624_v44  ;;  %548 = vrot.lane.b32.xlu1 %v764_v47, %s815_s1  ;;  %v517_v50 = vpop.f32.mrb[7].mxu1  ;;  %v595_v53 = vmul.f32 %v764_v47, %v764_v47 }
 0x25b   :  { %v594_v54 = vmul.f32 %v517_v50, %v517_v50  ;;  %546 = vrot.lane.b32.xlu0 %v517_v50, %s815_s1 }
 0x25c   :  { %v606_v55 = vadd.f32 %v605_v51, %v604_v48  ;;  %v628_v56 = vadd.f32 %v627_v52, %v626_v49  ;;  %v609_v61 = vsel %vm566_vm11, %v595_v53, 0.0  ;;  %v631_v62 = vsel %vm617_vm12, %v595_v53, 0.0 }
 0x25d   :  { %v607_v57 = vsel %vm566_vm11, %v594_v54, 0.0  ;;  %v629_v58 = vsel %vm617_vm12, %v594_v54, 0.0 }
 0x25e   :  { %v608_v59 = vadd.f32 %v607_v57, %v606_v55  ;;  %v630_v60 = vadd.f32 %v629_v58, %v628_v56 }
 0x260   :  { %v610_v63 = vadd.f32 %v609_v61, %v608_v59  ;;  %v632_v0 = vadd.f32 %v631_v62, %v630_v60 }
 0x262   :  { %v633_v1 = vrot.slane %v632_v0, 4  ;;  %v611_v23 = vrot.slane %v610_v63, 4 }
 0x264   :  { %v634_v2 = vadd.f32 %v633_v1, %v632_v0  ;;  %v612_v34 = vadd.f32 %v611_v23, %v610_v63 }
 0x266   :  { %v635_v3 = vrot.slane %v634_v2, 2  ;;  %v613_v41 = vrot.slane %v612_v34, 2 }
 0x268   :  { %v636_v4 = vadd.f32 %v635_v3, %v634_v2 }
 0x26a   :  { %v637_v5 = vrot.slane %v636_v4, 1 }
 0x26c   :  { %v638_v6 = vadd.f32 %v637_v5, %v636_v4 }
 0x26e   :  { %v640_v7 = vmax.f32 %v638_v6, 1e-16 }
 0x270   :  { %642 = vrot.lane.b32.xlu0 %v640_v7, %s815_s1 }
 0x2c0   :  { %v537_v8 = vpop.permute.xlu1 %536 }
 0x2c1   :  { %v559_v9 = vmul.f32 %v987_v19, %v537_v8  ;;  %v535_v10 = vpop.permute.xlu0 %534 }
 0x2c2   :  { %v558_v11 = vmul.f32 %v535_v10, %v487_v21 }
 0x2c3   :  { %v568_v12 = vsel %vm566_vm11, %v559_v9, 0.0 }
 0x2c4   :  { %v567_v13 = vsel %vm566_vm11, %v558_v11, 0.0  ;;  %v541_v14 = vpop.permute.xlu1 %540 }
 0x2c5   :  { %v569_v15 = vadd.f32 %v568_v12, %v567_v13  ;;  %v539_v16 = vpop.permute.xlu0 %538  ;;  %v561_v17 = vmul.f32 %v758_v27, %v541_v14 }
 0x2c6   :  { %v560_v18 = vmul.f32 %v539_v16, %v497_v30 }
 0x2c7   :  { %v572_v26 = vsel %vm566_vm11, %v561_v17, 0.0 }
 0x2c8   :  { %v570_v20 = vsel %vm566_vm11, %v560_v18, 0.0  ;;  %v545_v22 = vpop.permute.xlu1 %544 }
 0x2c9   :  { %v571_v24 = vadd.f32 %v570_v20, %v569_v15  ;;  %v543_v25 = vpop.permute.xlu0 %542  ;;  %v563_v19 = vmul.f32 %v761_v35, %v545_v22 }
 0x2ca   :  { %v562_v28 = vmul.f32 %v543_v25, %v507_v38  ;;  %v614_v38 = vadd.f32 %v613_v41, %v612_v34 }
 0x2cb   :  { %v573_v21 = vadd.f32 %v572_v26, %v571_v24  ;;  %v576_v27 = vsel %vm566_vm11, %v563_v19, 0.0 }
 0x2cc   :  { %v574_v29 = vsel %vm566_vm11, %v562_v28, 0.0  ;;  %v549_v31 = vpop.permute.xlu1 %548  ;;  %v615_v43 = vrot.slane %v614_v38, 1 }
 0x2cd   :  { %v575_v32 = vadd.f32 %v574_v29, %v573_v21  ;;  %v547_v33 = vpop.permute.xlu0 %546  ;;  %v565_v30 = vmul.f32 %v764_v47, %v549_v31 }
 0x2ce   :  { %v564_v36 = vmul.f32 %v547_v33, %v517_v50  ;;  %v616_v45 = vadd.f32 %v615_v43, %v614_v38 }
 0x2cf   :  { %v577_v37 = vadd.f32 %v576_v27, %v575_v32  ;;  %v580_v42 = vsel %vm566_vm11, %v565_v30, 0.0 }
 0x2d0   :  { %v578_v39 = vsel %vm566_vm11, %v564_v36, 0.0  ;;  %v639_v48 = vmax.f32 %v616_v45, 1e-16 }
 0x2d1   :  { %v579_v40 = vadd.f32 %v578_v39, %v577_v37 }
 0x2d3   :  { %v581_v35 = vadd.f32 %v580_v42, %v579_v40 }
 0x2d5   :  { %v582_v44 = vrot.slane %v581_v35, 4 }
 0x2d7   :  { %v583_v46 = vadd.f32 %v582_v44, %v581_v35 }
 0x2d9   :  { %v584_v49 = vrot.slane %v583_v46, 2 }
 0x2db   :  { %v585_v47 = vadd.f32 %v584_v49, %v583_v46 }
 0x2dd   :  { %v586_v50 = vrot.slane %v585_v47, 1 }
 0x2df   :  { %v587_v53 = vadd.f32 %v586_v50, %v585_v47 }
 0x2e2   :  { %v643_v51 = vpop.permute.xlu0 %642 }
 0x2e3   :  { %v645_v52 = vmul.f32 %v643_v51, %v639_v48 }
 0x2e5   :  { %785 = vrsqrt.f32 %v645_v52 }
 0x2ef   :  { %v786_v54 = vpop.eup %785 }
 0x2f0   :  { %v647_v55 = vmul.f32 %v786_v54, %v587_v53 }
 0x2f2   :  { %v648_v56 = vadd.f32 1.0, %v647_v55 }
 0x2f4   :  { %v649_v57 = vmul.f32 0.5, %v648_v56 }
 0x2f6   :  { %v650_v58 = vmax.f32 %v649_v57, 1e-07 }
 0x2f8   :  { %v651_v59 = vmin.f32 %v650_v58, 0.9999999 }
 0x2fa   :  { %653 = vst.msk [vmem:[#allocation12] sm:$0x1] %vm652_vm13, %v651_v59 }
 0x2fb   :  { %798 = shalt.err (!%p795_p4)
}
 0x2fc   :  { %s799_s18 = scalar_lea.hbm %s1044_s6, 16 }
 0x2fd   :  { %p800_p5 = scmp.ne.s32.totalorder %s1044_s6, %s799_s18  ;;  %p803_p6 = scmp.lt.u32.totalorder %s799_s18, %s1044_s6 }
 0x2ff   :  { %p805_p7 = pnand %p803_p6, %p800_p5 }
 0x301   :  { %808 = shalt.err (!%p805_p7)
}
 0x302   :  { %663 = dma.vmem_to_hbm [thread:$0]  %s661_s14, 16, %s1044_s6, [#allocation13]  }
 0x303   :  { %809 = dma.done.wait [#allocation13], 16  }
 0x304   :  { %810 = vsyncadd [#allocation13], 4294967280 }
 0x305   :  { %667 = vsyncpa [#allocation13], 1 }

</bundles_post_ra>
